<compile_context>
chip_gen: v5e
topology: v5e:2x2
jax: 0.10.0
libtpu: 0.0.40
codegen_flags: <defaults>
</compile_context>

<pallas_src>
import functools

import jax
import jax.numpy as jnp
from jax.experimental import pallas as pl
from jax.experimental.pallas import tpu as pltpu


@functools.lru_cache(maxsize=None)
def _roll_shifts_toward_higher_indices():
    """Probe (once) whether pltpu.roll on this backend follows the jnp.roll
    convention (elements move toward higher indices for positive shift).
    Used to pick the W-shift amounts robustly."""
    def probe(x_ref, o_ref):
        o_ref[...] = pltpu.roll(x_ref[...], 1, 0)

    x = jax.lax.broadcasted_iota(jnp.float32, (8, 128), 0)
    y = pl.pallas_call(
        probe, out_shape=jax.ShapeDtypeStruct((8, 128), jnp.float32))(x)
    return bool(y[0, 0] == 7.0)


def _make_global_local_kernel(roll_is_jnp):
    def kernel(x_ref, dw3_ref, pw_ref, pwb_ref, out_ref, pad_ref):
        x = x_ref[0].astype(jnp.float32)              # (H, W, C)
        H, W, C = x.shape

        # H-padded depthwise scratch: zero only the two halo rows once; the
        # interior rows are fully overwritten by every dw3x3 call below.
        zrow = jnp.zeros((1, W, C), jnp.float32)
        pad_ref[0:1, :, :] = zrow
        pad_ref[H + 1:H + 2, :, :] = zrow

        # W-edge masks (zero the column produced by the circular wrap).
        col = jax.lax.broadcasted_iota(jnp.int32, (1, W, 1), 1)
        not_first = col > 0            # valid columns for the x-1 tap
        not_last = col < W - 1         # valid columns for the x+1 tap
        # non-negative roll amounts realizing out[x] = v[x-1] / v[x+1]
        s_minus = 1 if roll_is_jnp else W - 1
        s_plus = W - 1 if roll_is_jnp else 1

        def dw3x3(v, w):                               # depthwise 3x3, pad=1
            # Aligned full-width store of the interior rows, then one load of
            # the whole H-padded plane.  The W-shifted planes are built once
            # (2 XLU rolls + 2 selects per dw3x3); the three H taps are plain
            # leading-axis slices (no sublane/lane repacking).
            pad_ref[1:H + 1, :, :] = v
            p = pad_ref[...]                           # (H+2, W, C)
            pm = jnp.where(not_first, pltpu.roll(p, s_minus, 1), 0.0)  # x-1
            pp = jnp.where(not_last, pltpu.roll(p, s_plus, 1), 0.0)    # x+1
            acc = pm[0:H] * w[0, 0] + p[0:H] * w[0, 1] + pp[0:H] * w[0, 2]
            acc = acc + pm[1:H + 1] * w[1, 0] + v * w[1, 1] + pp[1:H + 1] * w[1, 2]
            acc = acc + pm[2:H + 2] * w[2, 0] + p[2:H + 2] * w[2, 1] + pp[2:H + 2] * w[2, 2]
            return acc

        def pw(v, w_bf16):
            # 1x1 conv == (H*W, C) @ (C, C) on the MXU; bf16 in, f32 acc.
            y = jnp.dot(v.reshape(H * W, C).astype(jnp.bfloat16), w_bf16,
                        preferred_element_type=jnp.float32)
            return y.reshape(H, W, C)

        # ---- local branch (local2's dw1 is pre-folded into pw[1]) ----
        local = pw(dw3x3(x, dw3_ref[0]), pw_ref[0]) + pw(x, pw_ref[1])

        # ---- global branch: 3 x (dw3x3 -> BN -> 1x1 -> ReLU6), BN folded ----
        g = x
        for i in range(3):
            t = pw(dw3x3(g, dw3_ref[1 + i]), pw_ref[2 + i]) + pwb_ref[i]
            g = jnp.clip(t, 0.0, 6.0)                  # ReLU6

        merged = g + local

        # ---- proj: dw3x3 -> BN -> 1x1 (BN folded) ----
        out = pw(dw3x3(merged, dw3_ref[4]), pw_ref[5]) + pwb_ref[3]
        out_ref[0] = out.astype(out_ref.dtype)

    return kernel


def fold_params(params):
    """Host-side prep: fold the eval-mode BN affines and local2's depthwise
    1x1 scale into the pointwise weights, then cast them to bf16 for the MXU.

    Returns (dw3 f32 (5,3,3,C), pw bf16 (6,C,C), pwb f32 (4,1,C))."""
    dw3, dw1, pw, bns, bnb = params
    pw = pw.astype(jnp.float32)
    folded = [pw[0],                          # local1: unchanged
              dw1[0][:, None] * pw[1]]        # local2: (x*dw1) @ W == x @ (dw1*W)
    biases = []
    for i in range(4):                        # glb1, glb2, glb3, proj
        s, b = bns[i, 0], bnb[i, 0]
        folded.append(s[:, None] * pw[2 + i])     # (t*s+b)@W == t@(s*W) + b@W
        biases.append(b @ pw[2 + i])
    pw_folded = jnp.stack(folded).astype(jnp.bfloat16)
    pwb = jnp.stack(biases)[:, None, :].astype(jnp.float32)
    return dw3.astype(jnp.float32), pw_folded, pwb


def global_local_forward_nhwc(x_nhwc, folded_params):
    """Core entry point: x_nhwc (B, H, W, C) f32 -> (B, H, W, C)."""
    dw3, pw_bf16, pwb = folded_params
    B, H, W, C = x_nhwc.shape
    kernel = _make_global_local_kernel(_roll_shifts_toward_higher_indices())

    # Rough per-grid-step VMEM estimate: x/out double-buffered + pad scratch
    # + weights + headroom for the live f32 activation planes.
    plane = H * W * C * 4
    vmem_need = (4 * plane + (H + 2) * W * C * 4 + 8 * plane
                 + pw_bf16.size * 2 + dw3.size * 4 + pwb.size * 4)
    cp_kwargs = dict(dimension_semantics=("parallel",))
    if vmem_need > (16 << 20):
        # Raise the scoped-VMEM ceiling only when the conservative default
        # would not fit (capped; see the H-stripe TODO for v7x).
        cp_kwargs["vmem_limit_bytes"] = int(min(vmem_need, 100 << 20))

    return pl.pallas_call(
        kernel,
        out_shape=jax.ShapeDtypeStruct((B, H, W, C), x_nhwc.dtype),
        grid_spec=pltpu.PrefetchScalarGridSpec(
            num_scalar_prefetch=0,
            grid=(B,),
            in_specs=[
                pl.BlockSpec((1, H, W, C), lambda b: (b, 0, 0, 0)),  # x
                pl.BlockSpec((5, 3, 3, C), lambda b: (0, 0, 0, 0)),  # dw3x3 w
                pl.BlockSpec((6, C, C), lambda b: (0, 0, 0)),        # folded 1x1 w (bf16)
                pl.BlockSpec((4, 1, C), lambda b: (0, 0, 0)),        # folded 1x1 bias
            ],
            out_specs=pl.BlockSpec((1, H, W, C), lambda b: (b, 0, 0, 0)),
            scratch_shapes=[pltpu.VMEM((H + 2, W, C), jnp.float32)],
        ),
        compiler_params=pltpu.CompilerParams(**cp_kwargs),
    )(x_nhwc, dw3, pw_bf16, pwb)


def global_local_forward(x_nchw, params):
    """PyTorch-layout wrapper: (B, C, H, W) -> (B, C, H, W).
    Prefer global_local_forward_nhwc in production to avoid the two
    full-tensor HBM transposes at the boundary."""
    x = jnp.transpose(x_nchw, (0, 2, 3, 1))
    out = global_local_forward_nhwc(x, fold_params(params))
    return jnp.transpose(out, (0, 3, 1, 2))


def init_params(key, C):
    """Deterministic synthetic parameters.

    dw3: (5,3,3,C)  depthwise 3x3 kernels: [local1, glb1, glb2, glb3, proj]
    dw1: (1,C)      depthwise 1x1 kernel for local2
    pw : (6,C,C)    1x1 conv weights (Cin, Cout): [local1, local2, glb1..3, proj]
    bns/bnb: (4,1,C) folded BN scale/bias: [glb1, glb2, glb3, proj]
    """
    ks = jax.random.split(key, 7)
    s = 0.1
    dw3 = jax.random.normal(ks[0], (5, 3, 3, C), jnp.float32) * s
    dw1 = jax.random.normal(ks[1], (1, C), jnp.float32) * s
    pw = jax.random.normal(ks[2], (6, C, C), jnp.float32) * s
    gamma = 1.0 + 0.05 * jax.random.normal(ks[3], (4, 1, C), jnp.float32)
    beta = 0.05 * jax.random.normal(ks[4], (4, 1, C), jnp.float32)
    mean = 0.05 * jax.random.normal(ks[5], (4, 1, C), jnp.float32)
    var = jnp.abs(1.0 + 0.05 * jax.random.normal(ks[6], (4, 1, C), jnp.float32))
    eps = 1e-5
    scale = gamma / jnp.sqrt(var + eps)
    bias = beta - mean * scale
    return dw3, dw1, pw, scale, bias


def ref_forward(x_nchw, params):
    """Pure-JAX f32 reference of the same forward pass (correctness check)."""
    dw3, dw1, pw, bns, bnb = params
    x = jnp.transpose(x_nchw, (0, 2, 3, 1))
    C = x.shape[-1]

    def dwconv3(v, w):                          # w: (3,3,C)
        f = w[:, :, None, :]                    # HWIO, I=1 (grouped)
        return jax.lax.conv_general_dilated(
            v, f, (1, 1), 'SAME',
            dimension_numbers=('NHWC', 'HWIO', 'NHWC'),
            feature_group_count=C)

    def pwc(v, w):
        return jnp.einsum('bhwc,cd->bhwd', v, w)

    local = pwc(x * dw1[0], pw[1]) + pwc(dwconv3(x, dw3[0]), pw[0])
    g = x
    for i in range(3):
        t = dwconv3(g, dw3[1 + i])
        t = t * bns[i, 0] + bnb[i, 0]
        g = jnp.clip(pwc(t, pw[2 + i]), 0.0, 6.0)
    merged = g + local
    t = dwconv3(merged, dw3[4])
    t = t * bns[3, 0] + bnb[3, 0]
    out = pwc(t, pw[5])
    return jnp.transpose(out, (0, 3, 1, 2))


if __name__ == "__main__":
    key = jax.random.PRNGKey(0)
    # Small analogue of dim=256.  Note: C=32 leaves the MXU mostly idle and
    # produces masked lane stores; tune/benchmark at lane-dense C (e.g. 256).
    B, C, H, W = 2, 32, 16, 16
    kx, kp = jax.random.split(key)
    x = jax.random.normal(kx, (B, C, H, W), jnp.float32)
    params = init_params(kp, C)

    out = global_local_forward(x, params)
    out = jax.block_until_ready(out)
    assert out.shape == (B, C, H, W)

    ref = ref_forward(x, params)
    if not jnp.allclose(out, ref, atol=2e-2, rtol=2e-2):
        raise AssertionError(
            f"mismatch vs reference, max abs err {jnp.max(jnp.abs(out - ref))}")

    print("KERNEL_OK")
</pallas_src>

<mosaic_0001>
module attributes {stable_mosaic.version = 11 : i64} {
  func.func @probe(%arg0: memref<8x128xf32, #tpu.memory_space<vmem>>, %arg1: memref<8x128xf32, #tpu.memory_space<vmem>>) attributes {dimension_semantics = [], scalar_prefetch = 0 : i64, scratch_operands = 0 : i64, tpu.core_type = #tpu.core_type<tc>} {
    %c0 = arith.constant 0 : index
    %c0_0 = arith.constant 0 : index
    %0 = vector.load %arg0[%c0, %c0_0] : memref<8x128xf32, #tpu.memory_space<vmem>>, vector<8x128xf32>
    %c1_i32 = arith.constant 1 : i32
    %1 = tpu.dynamic_rotate %0 by %c1_i32 dim 0 : vector<8x128xf32>, i32 -> vector<8x128xf32>
    %c0_1 = arith.constant 0 : index
    %c0_2 = arith.constant 0 : index
    %2 = vector.load %arg1[%c0_1, %c0_2] : memref<8x128xf32, #tpu.memory_space<vmem>>, vector<8x128xf32>
    tpu.vector_store %arg1[%c0_1, %c0_2], %1 {strides = array<i32>} : memref<8x128xf32, #tpu.memory_space<vmem>>, vector<8x128xf32>,
    return
  }
}

</mosaic_0001>

<bundles_post_ra>
// kernel: tpu_custom_call.1
= control target key start
LH: loop header
LB: loop body
LE: loop exit
PB: predicated region body
PF: predicated region fallthrough
CT: control target
= control target key end

     0   :  { %6 = vsyncpa [#allocation3], 0  ;;  %s115_s0 = inlined_call_operand.hbm [shape: f32[8,128], index: 0, kind: input, shape index: {}]   ;;  %s116_s1 = inlined_call_operand.hbm [shape: f32[8,128], index: 1, kind: output, shape index: {}]  }
   0x1   :  { %7 = vsyncpa [#allocation4], 0  ;;  %s13_s8 = sshll.u32 %s115_s0, 4  ;;  %s97_s9 = smov [#allocation2]   ;;  %s14_s8 = int_to_ptr.hbm [resolvable:$true] %s13_s8 }
   0x2   :  { %s15_s10 = sshll.u32 %s97_s9, 4  ;;  %s16_s10 = int_to_ptr.vmem [resolvable:$true] %s15_s10 }
   0x3   :  { %18 = dma.hbm_to_vmem [thread:$0]  %s14_s8, 128, %s16_s10, [#allocation3]  }
   0x4   :  { %93 = dma.done.wait [#allocation3], 128  }
   0x5   :  { %94 = vsyncadd [#allocation3], 4294967168  ;;  %s98_s11 = smov [#allocation5]   ;;  %s33_s15 = sshll.u32 %s116_s1, 4  ;;  %v23_v0 = vld [vmem:[#allocation2] sm:$0xff]  ;;  %s34_s15 = int_to_ptr.hbm [resolvable:$true] %s33_s15 }
   0x6   :  { %s31_s12 = sshll.u32 %s98_s11, 4  ;;  %v24_v1 = vrot.slane %v23_v0, 7  ;;  %s32_s12 = int_to_ptr.vmem [resolvable:$true] %s31_s12 }
   0x8   :  { %25 = vst [vmem:[#allocation5] sm:$0xff] %v24_v1 }
   0x9   :  { %36 = dma.vmem_to_hbm [thread:$0]  %s32_s12, 128, %s34_s15, [#allocation4]  }
   0xa   :  { %95 = dma.done.wait [#allocation4], 128  }
   0xb   :  { %96 = vsyncadd [#allocation4], 4294967168 }
   0xc   :  { %41 = vsyncpa [#allocation3], 1 }
   0xd   :  { %42 = vsyncpa [#allocation4], 1 }

</bundles_post_ra>
